<compile_context>
chip_gen: v7x
topology: tpu7x:2x2x1
jax: 0.10.0
libtpu: 0.0.40
codegen_flags: <defaults>
</compile_context>

<pallas_src>
import jax
import jax.numpy as jnp
from jax import lax
from jax.experimental import pallas as pl
from jax.experimental.pallas import tpu as pltpu

IN_FEATURES = 784
OUT_FEATURES = 10
OUT_PAD = 128          # lane-dense padded logits width
NEG_BIG = -1e30        # bias for padded logit columns (excluded from softmax)


def _linear_logsoftmax_kernel(x_ref, w_ref, b_ref, o_ref):
    # x_ref: [TM, 784]   w_ref: [128, 784]   b_ref: [1, 128]   o_ref: [TM, 128]
    x = x_ref[...]
    w = w_ref[...]
    b = b_ref[...]

    # y = x @ W^T + b  : contract dim 1 of x with dim 1 of W (torch layout),
    # keeping the weight lane-dense in VMEM and avoiding a wrapper transpose.
    y = lax.dot_general(
        x, w,
        dimension_numbers=(((1,), (1,)), ((), ())),
        preferred_element_type=jnp.float32,
    ) + b  # [TM, 128]; padded columns are ~NEG_BIG

    # Numerically stable log_softmax along the last dim. Padded columns carry
    # bias NEG_BIG so they never win the max and exp() underflows to 0, leaving
    # the normalizer identical to the unpadded 10-way softmax.
    m = jnp.max(y, axis=-1, keepdims=True)
    z = y - m
    lse = jnp.log(jnp.sum(jnp.exp(z), axis=-1, keepdims=True))
    o_ref[...] = (z - lse).astype(o_ref.dtype)


def linear_log_softmax(x_nchw, weight, bias):
    """x_nchw: [B, C, H, W] with C*H*W == 784.
    weight: [10, 784] (torch convention), bias: [10]."""
    B = x_nchw.shape[0]
    x2d = x_nchw.reshape(B, -1).astype(jnp.float32)   # [B, 784]

    # Pad logits dimension to 128 lanes: zero weight rows, NEG_BIG bias.
    w_pad = jnp.zeros((OUT_PAD, IN_FEATURES), jnp.float32)
    w_pad = w_pad.at[:OUT_FEATURES, :].set(weight.astype(jnp.float32))
    b_pad = jnp.full((1, OUT_PAD), NEG_BIG, jnp.float32)
    b_pad = b_pad.at[0, :OUT_FEATURES].set(bias.astype(jnp.float32))

    # Batch tiling: <=512 rows/tile (~1.6 MiB f32 per buffer) keeps double-
    # buffered x tiles + resident weight comfortably inside v7x's VMEM while
    # reaching ~85% of HBM roofline on v5e/v6e per measured Pallas data.
    if B >= 512:
        TM = 512
    else:
        TM = max(8, ((B + 7) // 8) * 8)    # respect the sublane-of-8 rule
    B_pad = ((B + TM - 1) // TM) * TM
    if B_pad != B:
        x2d = jnp.pad(x2d, ((0, B_pad - B), (0, 0)))

    grid = (pl.cdiv(B_pad, TM),)

    out = pl.pallas_call(
        _linear_logsoftmax_kernel,
        out_shape=jax.ShapeDtypeStruct((B_pad, OUT_PAD), jnp.float32),
        grid=grid,
        in_specs=[
            pl.BlockSpec((TM, IN_FEATURES), lambda i: (i, 0)),       # x tile
            pl.BlockSpec((OUT_PAD, IN_FEATURES), lambda i: (0, 0)),  # W resident
            pl.BlockSpec((1, OUT_PAD), lambda i: (0, 0)),            # bias resident
        ],
        out_specs=pl.BlockSpec((TM, OUT_PAD), lambda i: (i, 0)),
        compiler_params=pltpu.CompilerParams(
            dimension_semantics=("parallel",)),
    )(x2d, w_pad, b_pad)

    return out[:B, :OUT_FEATURES]


def _reference(x_nchw, weight, bias):
    x2d = x_nchw.reshape(x_nchw.shape[0], -1)
    y = x2d @ weight.T + bias
    return jax.nn.log_softmax(y, axis=1)


if __name__ == "__main__":
    key = jax.random.PRNGKey(0)
    kx, kw, kb = jax.random.split(key, 3)

    # Small input consistent with fc(in_features=784): [2, 1, 28, 28]
    x = jax.random.normal(kx, (2, 1, 28, 28), dtype=jnp.float32)

    # Deterministic parameter init (matching torch.nn.Linear's uniform bound)
    bound = 1.0 / (IN_FEATURES ** 0.5)
    weight = jax.random.uniform(
        kw, (OUT_FEATURES, IN_FEATURES), minval=-bound, maxval=bound,
        dtype=jnp.float32)
    bias = jax.random.uniform(
        kb, (OUT_FEATURES,), minval=-bound, maxval=bound, dtype=jnp.float32)

    out = linear_log_softmax(x, weight, bias)
    out = jax.block_until_ready(out)

    ref = _reference(x, weight, bias)
    assert out.shape == (2, OUT_FEATURES)
    assert jnp.allclose(out, ref, atol=1e-5, rtol=1e-5), "mismatch vs reference"

    print("KERNEL_OK")
</pallas_src>

<mosaic_0001>
module attributes {stable_mosaic.version = 11 : i64} {
  func.func @_linear_logsoftmax_kernel(%arg0: i32, %arg1: memref<8x784xf32, #tpu.memory_space<vmem>>, %arg2: memref<128x784xf32, #tpu.memory_space<vmem>>, %arg3: memref<1x128xf32, #tpu.memory_space<vmem>>, %arg4: memref<8x128xf32, #tpu.memory_space<vmem>>) attributes {dimension_semantics = [#tpu.dimension_semantics<parallel>], iteration_bounds = array<i64: 1>, scalar_prefetch = 0 : i64, scratch_operands = 0 : i64, tpu.core_type = #tpu.core_type<tc>, window_params = [{transform_indices = @transform_0, window_bounds = array<i64: 8, 784>}, {pipeline_mode = #tpu.pipeline_mode<synchronous>, transform_indices = @transform_1, window_bounds = array<i64: 128, 784>}, {pipeline_mode = #tpu.pipeline_mode<synchronous>, transform_indices = @transform_2, window_bounds = array<i64: 1, 128>}, {transform_indices = @transform_3, window_bounds = array<i64: 8, 128>}]} {
    %c0 = arith.constant 0 : index
    %c0_0 = arith.constant 0 : index
    %0 = vector.load %arg1[%c0, %c0_0] : memref<8x784xf32, #tpu.memory_space<vmem>>, vector<8x784xf32>
    %c0_1 = arith.constant 0 : index
    %c0_2 = arith.constant 0 : index
    %1 = vector.load %arg2[%c0_1, %c0_2] : memref<128x784xf32, #tpu.memory_space<vmem>>, vector<128x784xf32>
    %c0_3 = arith.constant 0 : index
    %c0_4 = arith.constant 0 : index
    %2 = vector.load %arg3[%c0_3, %c0_4] : memref<1x128xf32, #tpu.memory_space<vmem>>, vector<1x128xf32>
    %cst = arith.constant dense<0.000000e+00> : vector<8x128xf32>
    %3 = tpu.matmul %0, %1, %cst {dimension_numbers = #tpu.dot_dimension_numbers<[1], [1], [0], [0], [0, 0, 1, 0], [], []>} : vector<8x784xf32>, vector<128x784xf32>, vector<8x128xf32> -> vector<8x128xf32>
    %4 = vector.broadcast %2 : vector<1x128xf32> to vector<8x128xf32>
    %5 = arith.addf %3, %4 : vector<8x128xf32>
    %cst_5 = arith.constant dense<0xFF800000> : vector<8xf32>
    %6 = vector.multi_reduction <maximumf>, %5, %cst_5 [1] : vector<8x128xf32> to vector<8xf32>
    %7 = vector.shape_cast %6 : vector<8xf32> to vector<8x1xf32>
    %8 = vector.broadcast %7 : vector<8x1xf32> to vector<8x128xf32>
    %9 = arith.subf %5, %8 : vector<8x128xf32>
    %10 = math.exp %9 : vector<8x128xf32>
    %cst_6 = arith.constant dense<0.000000e+00> : vector<8xf32>
    %11 = vector.multi_reduction <add>, %10, %cst_6 [1] : vector<8x128xf32> to vector<8xf32>
    %12 = vector.shape_cast %11 : vector<8xf32> to vector<8x1xf32>
    %13 = math.log %12 : vector<8x1xf32>
    %14 = vector.broadcast %13 : vector<8x1xf32> to vector<8x128xf32>
    %15 = arith.subf %9, %14 : vector<8x128xf32>
    %c0_7 = arith.constant 0 : index
    %c0_8 = arith.constant 0 : index
    %16 = vector.load %arg4[%c0_7, %c0_8] : memref<8x128xf32, #tpu.memory_space<vmem>>, vector<8x128xf32>
    tpu.vector_store %arg4[%c0_7, %c0_8], %15 {strides = array<i32>} : memref<8x128xf32, #tpu.memory_space<vmem>>, vector<8x128xf32>,
    return
  }
  func.func @transform_0(%arg0: i32) -> (i32, i32) {
    %c0_i32 = arith.constant 0 : i32
    %c0_i32_0 = arith.constant 0 : i32
    return %arg0, %c0_i32 : i32, i32
  }
  func.func @transform_1(%arg0: i32) -> (i32, i32) {
    %c0_i32 = arith.constant 0 : i32
    %c0_i32_0 = arith.constant 0 : i32
    %c0_i32_1 = arith.constant 0 : i32
    return %c0_i32, %c0_i32_0 : i32, i32
  }
  func.func @transform_2(%arg0: i32) -> (i32, i32) {
    %c0_i32 = arith.constant 0 : i32
    %c0_i32_0 = arith.constant 0 : i32
    %c0_i32_1 = arith.constant 0 : i32
    return %c0_i32, %c0_i32_0 : i32, i32
  }
  func.func @transform_3(%arg0: i32) -> (i32, i32) {
    %c0_i32 = arith.constant 0 : i32
    %c0_i32_0 = arith.constant 0 : i32
    return %arg0, %c0_i32 : i32, i32
  }
}

</mosaic_0001>

<bundles_post_ra>
// kernel: tpu_custom_call.1
= control target key start
LH: loop header
LB: loop body
LE: loop exit
PB: predicated region body
PF: predicated region fallthrough
CT: control target
= control target key end

     0   :  { %s1161_s0 = inlined_call_operand.vmem [shape: f32[8,784], index: 0, kind: input, shape index: {}]   ;;  %s1162_s1 = inlined_call_operand.vmem [shape: f32[128,784], index: 1, kind: input, shape index: {}]   ;;  %s1163_s2 = inlined_call_operand.vmem [shape: f32[1,128], index: 2, kind: input, shape index: {}]   ;;  %s1164_s3 = inlined_call_operand.hbm [shape: f32[8,128], index: 3, kind: output, shape index: {}]  }
   0x1   :  { %v23_v0 = vld [vmem:[%s1162_s1 + $0x8] sm:$0xff]  ;;  %v30_v1 = vld [vmem:[%s1162_s1 + $0x40] sm:$0xff]  ;;  %v29_v6 = vld [vmem:[%s1162_s1 + $0x38] sm:$0xff] }
   0x2   :  { %v27_v2 = vld [vmem:[%s1162_s1 + $0x28] sm:$0xff]  ;;  %v568_v3 = vpack.c.bf16 %v30_v1, %v23_v0  ;;  %v34_v4 = vld [vmem:[%s1162_s1 + $0x60] sm:$0xff]  ;;  %v33_v10 = vld [vmem:[%s1162_s1 + $0x58] sm:$0xff] }
   0x3   :  { %v22_v5 = vld [vmem:[%s1162_s1] sm:$0xff]  ;;  %v632_v7 = vpack.c.bf16 %v34_v4, %v27_v2  ;;  %v37_v11 = vld [vmem:[%s1162_s1 + $0x78] sm:$0xff]  ;;  %v44_v13 = vld [vmem:[%s1162_s1 + $0xb0] sm:$0xff] }
   0x4   :  { %v570_v8 = vpack.c.bf16 %v29_v6, %v22_v5  ;;  %v26_v9 = vld [vmem:[%s1162_s1 + $0x20] sm:$0xff]  ;;  %569 = vmatprep.subr.bf16.mxu1 %v568_v3  ;;  %v41_v14 = vld [vmem:[%s1162_s1 + $0x98] sm:$0xff]  ;;  %v48_v15 = vld [vmem:[%s1162_s1 + $0xd0] sm:$0xff]  ;;  %v572_v16 = vpack.c.bf16 %v44_v13, %v37_v11 }
   0x5   :  { %v634_v12 = vpack.c.bf16 %v33_v10, %v26_v9  ;;  %633 = vmatprep.subr.bf16.mxu0 %v632_v7  ;;  %v636_v17 = vpack.c.bf16 %v48_v15, %v41_v14  ;;  %v36_v18 = vld [vmem:[%s1162_s1 + $0x70] sm:$0xff]  ;;  %v43_v19 = vld [vmem:[%s1162_s1 + $0xa8] sm:$0xff]  ;;  %v58_v23 = vld [vmem:[%s1162_s1 + $0x120] sm:$0xff] }
   0x6   :  { %571 = vmatpush1.bf16.xpose.msra.mxu1 %v570_v8  ;;  %v40_v20 = vld [vmem:[%s1162_s1 + $0x90] sm:$0xff]  ;;  %v47_v21 = vld [vmem:[%s1162_s1 + $0xc8] sm:$0xff]  ;;  %v62_v25 = vld [vmem:[%s1162_s1 + $0x140] sm:$0xff]  ;;  %v574_v26 = vpack.c.bf16 %v43_v19, %v36_v18 }
   0x7   :  { %635 = vmatpush1.bf16.xpose.msra.mxu0 %v634_v12  ;;  %573 = vmatprep.subr.bf16.mxu1 %v572_v16  ;;  %v51_v22 = vld [vmem:[%s1162_s1 + $0xe8] sm:$0xff]  ;;  %v638_v27 = vpack.c.bf16 %v47_v21, %v40_v20  ;;  %v50_v30 = vld [vmem:[%s1162_s1 + $0xe0] sm:$0xff]  ;;  %v57_v31 = vld [vmem:[%s1162_s1 + $0x118] sm:$0xff] }
   0x8   :  { %637 = vmatprep.subr.bf16.mxu0 %v636_v17  ;;  %v55_v24 = vld [vmem:[%s1162_s1 + $0x108] sm:$0xff]  ;;  %v576_v28 = vpack.c.bf16 %v58_v23, %v51_v22  ;;  %v54_v32 = vld [vmem:[%s1162_s1 + $0x100] sm:$0xff]  ;;  %v61_v33 = vld [vmem:[%s1162_s1 + $0x138] sm:$0xff]  ;;  %v578_v38 = vpack.c.bf16 %v57_v31, %v50_v30 }
   0x9   :  { %v640_v29 = vpack.c.bf16 %v62_v25, %v55_v24  ;;  %v65_v34 = vld [vmem:[%s1162_s1 + $0x158] sm:$0xff]  ;;  %v72_v35 = vld [vmem:[%s1162_s1 + $0x190] sm:$0xff]  ;;  %v642_v39 = vpack.c.bf16 %v61_v33, %v54_v32  ;;  %v71_v43 = vld [vmem:[%s1162_s1 + $0x188] sm:$0xff] }
   0xa   :  { %v69_v36 = vld [vmem:[%s1162_s1 + $0x178] sm:$0xff]  ;;  %v76_v37 = vld [vmem:[%s1162_s1 + $0x1b0] sm:$0xff]  ;;  %v580_v40 = vpack.c.bf16 %v72_v35, %v65_v34  ;;  %v75_v45 = vld [vmem:[%s1162_s1 + $0x1a8] sm:$0xff] }
   0xb   :  { %v644_v41 = vpack.c.bf16 %v76_v37, %v69_v36  ;;  %v64_v42 = vld [vmem:[%s1162_s1 + $0x150] sm:$0xff]  ;;  %v16_v46 = vld [vmem:[%s1161_s0 + $0x8] sm:$0xff]  ;;  %v86_v48 = vld [vmem:[%s1162_s1 + $0x200] sm:$0xff] }
   0xc   :  { %v68_v44 = vld [vmem:[%s1162_s1 + $0x170] sm:$0xff]  ;;  %v79_v47 = vld [vmem:[%s1162_s1 + $0x1c8] sm:$0xff]  ;;  %257 = vmatprep.mubr.f32.mxu1 %v16_v46  ;;  %v90_v51 = vld [vmem:[%s1162_s1 + $0x220] sm:$0xff]  ;;  %v582_v52 = vpack.c.bf16 %v71_v43, %v64_v42 }
   0xd   :  { %v20_v49 = vld [vmem:[%s1161_s0 + $0x28] sm:$0xff]  ;;  %v646_v53 = vpack.c.bf16 %v75_v45, %v68_v44  ;;  %v584_v54 = vpack.c.bf16 %v86_v48, %v79_v47  ;;  %v78_v56 = vld [vmem:[%s1162_s1 + $0x1c0] sm:$0xff]  ;;  %v85_v57 = vld [vmem:[%s1162_s1 + $0x1f8] sm:$0xff] }
   0xe   :  { %575 = vmatpush1.bf16.xpose.msra.mxu1 %v574_v26  ;;  %v83_v50 = vld [vmem:[%s1162_s1 + $0x1e8] sm:$0xff]  ;;  %397 = vmatprep.mubr.f32.mxu0 %v20_v49  ;;  %v82_v58 = vld [vmem:[%s1162_s1 + $0x1e0] sm:$0xff]  ;;  %v89_v59 = vld [vmem:[%s1162_s1 + $0x218] sm:$0xff]  ;;  %v586_v0 = vpack.c.bf16 %v85_v57, %v78_v56 }
   0xf   :  { %639 = vmatpush1.bf16.xpose.msra.mxu0 %v638_v27  ;;  %577 = vmatprep.subr.bf16.mxu1 %v576_v28  ;;  %v648_v55 = vpack.c.bf16 %v90_v51, %v83_v50  ;;  %v93_v60 = vld [vmem:[%s1162_s1 + $0x238] sm:$0xff]  ;;  %v100_v61 = vld [vmem:[%s1162_s1 + $0x270] sm:$0xff]  ;;  %v650_v1 = vpack.c.bf16 %v89_v59, %v82_v58  ;;  %v99_v5 = vld [vmem:[%s1162_s1 + $0x268] sm:$0xff] }
  0x10   :  { %641 = vmatprep.subr.bf16.mxu0 %v640_v29  ;;  %v97_v62 = vld [vmem:[%s1162_s1 + $0x258] sm:$0xff]  ;;  %v104_v63 = vld [vmem:[%s1162_s1 + $0x290] sm:$0xff]  ;;  %v588_v2 = vpack.c.bf16 %v100_v61, %v93_v60  ;;  %v103_v7 = vld [vmem:[%s1162_s1 + $0x288] sm:$0xff] }
  0x11   :  { %v652_v3 = vpack.c.bf16 %v104_v63, %v97_v62  ;;  %v92_v4 = vld [vmem:[%s1162_s1 + $0x230] sm:$0xff]  ;;  %v107_v8 = vld [vmem:[%s1162_s1 + $0x2a8] sm:$0xff]  ;;  %v114_v9 = vld [vmem:[%s1162_s1 + $0x2e0] sm:$0xff] }
  0x12   :  { %v96_v6 = vld [vmem:[%s1162_s1 + $0x250] sm:$0xff]  ;;  %v111_v10 = vld [vmem:[%s1162_s1 + $0x2c8] sm:$0xff]  ;;  %v118_v11 = vld [vmem:[%s1162_s1 + $0x300] sm:$0xff]  ;;  %v590_v12 = vpack.c.bf16 %v99_v5, %v92_v4 }
  0x16   :  { %579 = vmatpush1.bf16.xpose.msra.mxu1 %v578_v38 }
  0x17   :  { %643 = vmatpush1.bf16.xpose.msra.mxu0 %v642_v39  ;;  %581 = vmatprep.subr.bf16.mxu1 %v580_v40 }
  0x18   :  { %645 = vmatprep.subr.bf16.mxu0 %v644_v41 }
  0x1e   :  { %583 = vmatpush1.bf16.xpose.msra.mxu1 %v582_v52 }
  0x1f   :  { %647 = vmatpush1.bf16.xpose.msra.mxu0 %v646_v53  ;;  %585 = vmatprep.subr.bf16.mxu1 %v584_v54 }
  0x20   :  { %649 = vmatprep.subr.bf16.mxu0 %v648_v55 }
  0x26   :  { %587 = vmatpush1.bf16.xpose.msra.mxu1 %v586_v0 }
  0x27   :  { %651 = vmatpush1.bf16.xpose.msra.mxu0 %v650_v1  ;;  %589 = vmatprep.subr.bf16.mxu1 %v588_v2 }
  0x28   :  { %653 = vmatprep.subr.bf16.mxu0 %v652_v3 }
  0x29   :  { %8 = vsyncpa [#allocation3], 0  ;;  %v654_v13 = vpack.c.bf16 %v103_v7, %v96_v6  ;;  %v592_v14 = vpack.c.bf16 %v114_v9, %v107_v8  ;;  %v656_v15 = vpack.c.bf16 %v118_v11, %v111_v10  ;;  %v106_v16 = vld [vmem:[%s1162_s1 + $0x2a0] sm:$0xff]  ;;  %v113_v17 = vld [vmem:[%s1162_s1 + $0x2d8] sm:$0xff]  ;;  %v734_v40 = vmov 0.0|0.0  }
  0x2a   :  { %v110_v18 = vld [vmem:[%s1162_s1 + $0x2c0] sm:$0xff]  ;;  %v117_v19 = vld [vmem:[%s1162_s1 + $0x2f8] sm:$0xff]  ;;  %v128_v21 = vld [vmem:[%s1162_s1 + $0x350] sm:$0xff]  ;;  %v594_v24 = vpack.c.bf16 %v113_v17, %v106_v16  ;;  %vm141_vm0 = vcmask 130048   ;;  %vm735_vm2 = vmmov 0   ;;  %v736_v57 = vmov 0.0  }
  0x2b   :  { %v121_v20 = vld [vmem:[%s1162_s1 + $0x318] sm:$0xff]  ;;  %v132_v23 = vld [vmem:[%s1162_s1 + $0x370] sm:$0xff]  ;;  %v658_v25 = vpack.c.bf16 %v117_v19, %v110_v18  ;;  %v127_v29 = vld [vmem:[%s1162_s1 + $0x348] sm:$0xff] }
  0x2c   :  { %v125_v22 = vld [vmem:[%s1162_s1 + $0x338] sm:$0xff]  ;;  %v596_v26 = vpack.c.bf16 %v128_v21, %v121_v20  ;;  %v120_v28 = vld [vmem:[%s1162_s1 + $0x310] sm:$0xff]  ;;  %v131_v31 = vld [vmem:[%s1162_s1 + $0x368] sm:$0xff] }
  0x2d   :  { %v660_v27 = vpack.c.bf16 %v132_v23, %v125_v22  ;;  %v124_v30 = vld [vmem:[%s1162_s1 + $0x330] sm:$0xff]  ;;  %v25_v32 = vld [vmem:[%s1162_s1 + $0x18] sm:$0xff]  ;;  %v598_v34 = vpack.c.bf16 %v127_v29, %v120_v28  ;;  %v31_v38 = vld [vmem:[%s1162_s1 + $0x48] sm:$0xff] }
  0x2e   :  { %591 = vmatpush1.bf16.xpose.msra.mxu1 %v590_v12  ;;  %v32_v33 = vld [vmem:[%s1162_s1 + $0x50] sm:$0xff]  ;;  %v662_v35 = vpack.c.bf16 %v131_v31, %v124_v30  ;;  %v35_v41 = vld [vmem:[%s1162_s1 + $0x68] sm:$0xff]  ;;  %v46_v43 = vld [vmem:[%s1162_s1 + $0xc0] sm:$0xff] }
  0x2f   :  { %655 = vmatpush1.bf16.xpose.msra.mxu0 %v654_v13  ;;  %593 = vmatprep.subr.bf16.mxu1 %v592_v14  ;;  %v600_v36 = vpack.c.bf16 %v32_v33, %v25_v32  ;;  %v24_v37 = vld [vmem:[%s1162_s1 + $0x10] sm:$0xff]  ;;  %v39_v42 = vld [vmem:[%s1162_s1 + $0x88] sm:$0xff]  ;;  %v15_v44 = vld [vmem:[%s1161_s0] sm:$0xff] }
  0x30   :  { %657 = vmatprep.subr.bf16.mxu0 %v656_v15  ;;  %v28_v39 = vld [vmem:[%s1162_s1 + $0x30] sm:$0xff]  ;;  %v602_v45 = vpack.c.bf16 %v31_v38, %v24_v37  ;;  %v19_v46 = vld [vmem:[%s1161_s0 + $0x20] sm:$0xff]  ;;  %v604_v48 = vpack.c.bf16 %v46_v43, %v39_v42  ;;  %vm989_vm1 = vmpackc.low %vm141_vm0, %vm141_vm0 }
  0x31   :  { %v665_v47 = vpack.c.bf16 %v35_v41, %v28_v39  ;;  %v18_v50 = vld [vmem:[%s1161_s0 + $0x18] sm:$0xff]  ;;  %v38_v51 = vld [vmem:[%s1162_s1 + $0x80] sm:$0xff]  ;;  %v60_v56 = vld [vmem:[%s1162_s1 + $0x130] sm:$0xff] }
  0x32   :  { %v45_v52 = vld [vmem:[%s1162_s1 + $0xb8] sm:$0xff]  ;;  %v42_v53 = vld [vmem:[%s1162_s1 + $0xa0] sm:$0xff]  ;;  %v52_v61 = vld [vmem:[%s1162_s1 + $0xf0] sm:$0xff] }
  0x33   :  { %v49_v54 = vld [vmem:[%s1162_s1 + $0xd8] sm:$0xff]  ;;  %v606_v58 = vpack.c.bf16 %v45_v52, %v38_v51  ;;  %v59_v62 = vld [vmem:[%s1162_s1 + $0x128] sm:$0xff]  ;;  %v56_v63 = vld [vmem:[%s1162_s1 + $0x110] sm:$0xff] }
  0x34   :  { %v53_v55 = vld [vmem:[%s1162_s1 + $0xf8] sm:$0xff]  ;;  %v669_v59 = vpack.c.bf16 %v49_v54, %v42_v53  ;;  %v63_v0 = vld [vmem:[%s1162_s1 + $0x148] sm:$0xff]  ;;  %v74_v2 = vld [vmem:[%s1162_s1 + $0x1a0] sm:$0xff]  ;;  %v610_v3 = vpack.c.bf16 %v59_v62, %v52_v61 }
  0x35   :  { %v608_v60 = vpack.c.bf16 %v60_v56, %v53_v55  ;;  %v67_v1 = vld [vmem:[%s1162_s1 + $0x168] sm:$0xff]  ;;  %v673_v4 = vpack.c.bf16 %v63_v0, %v56_v63  ;;  %v66_v6 = vld [vmem:[%s1162_s1 + $0x160] sm:$0xff]  ;;  %v73_v7 = vld [vmem:[%s1162_s1 + $0x198] sm:$0xff] }
  0x36   :  { %595 = vmatpush1.bf16.xpose.msra.mxu1 %v594_v24  ;;  %v612_v5 = vpack.c.bf16 %v74_v2, %v67_v1  ;;  %v70_v8 = vld [vmem:[%s1162_s1 + $0x180] sm:$0xff]  ;;  %v77_v9 = vld [vmem:[%s1162_s1 + $0x1b8] sm:$0xff]  ;;  %v88_v11 = vld [vmem:[%s1162_s1 + $0x210] sm:$0xff]  ;;  %v614_v12 = vpack.c.bf16 %v73_v7, %v66_v6 }
  0x37   :  { %659 = vmatpush1.bf16.xpose.msra.mxu0 %v658_v25  ;;  %597 = vmatprep.subr.bf16.mxu1 %v596_v26  ;;  %v81_v10 = vld [vmem:[%s1162_s1 + $0x1d8] sm:$0xff]  ;;  %v677_v13 = vpack.c.bf16 %v77_v9, %v70_v8  ;;  %v80_v15 = vld [vmem:[%s1162_s1 + $0x1d0] sm:$0xff]  ;;  %v87_v16 = vld [vmem:[%s1162_s1 + $0x208] sm:$0xff] }
  0x38   :  { %661 = vmatprep.subr.bf16.mxu0 %v660_v27  ;;  %v616_v14 = vpack.c.bf16 %v88_v11, %v81_v10  ;;  %v84_v17 = vld [vmem:[%s1162_s1 + $0x1f0] sm:$0xff]  ;;  %v91_v18 = vld [vmem:[%s1162_s1 + $0x228] sm:$0xff]  ;;  %v102_v20 = vld [vmem:[%s1162_s1 + $0x280] sm:$0xff]  ;;  %v618_v21 = vpack.c.bf16 %v87_v16, %v80_v15 }
  0x39   :  { %v95_v19 = vld [vmem:[%s1162_s1 + $0x248] sm:$0xff]  ;;  %v681_v22 = vpack.c.bf16 %v91_v18, %v84_v17  ;;  %v94_v24 = vld [vmem:[%s1162_s1 + $0x240] sm:$0xff]  ;;  %v101_v25 = vld [vmem:[%s1162_s1 + $0x278] sm:$0xff] }
  0x3a   :  { %v620_v23 = vpack.c.bf16 %v102_v20, %v95_v19  ;;  %v98_v26 = vld [vmem:[%s1162_s1 + $0x260] sm:$0xff]  ;;  %v105_v27 = vld [vmem:[%s1162_s1 + $0x298] sm:$0xff]  ;;  %v116_v29 = vld [vmem:[%s1162_s1 + $0x2f0] sm:$0xff]  ;;  %v622_v30 = vpack.c.bf16 %v101_v25, %v94_v24 }
  0x3b   :  { %v109_v28 = vld [vmem:[%s1162_s1 + $0x2b8] sm:$0xff]  ;;  %v685_v31 = vpack.c.bf16 %v105_v27, %v98_v26  ;;  %v108_v33 = vld [vmem:[%s1162_s1 + $0x2b0] sm:$0xff]  ;;  %v123_v37 = vld [vmem:[%s1162_s1 + $0x328] sm:$0xff] }
  0x3c   :  { %v624_v32 = vpack.c.bf16 %v116_v29, %v109_v28  ;;  %v130_v38 = vld [vmem:[%s1162_s1 + $0x360] sm:$0xff] }
  0x3d   :  { %v628_v42 = vpack.c.bf16 %v130_v38, %v123_v37  ;;  %v122_v43 = vld [vmem:[%s1162_s1 + $0x320] sm:$0xff] }
  0x3e   :  { %599 = vmatpush1.bf16.xpose.msra.mxu1 %v598_v34  ;;  %v115_v34 = vld [vmem:[%s1162_s1 + $0x2e8] sm:$0xff]  ;;  %v498_v51 = vld [vmem:[%s1163_s2] ss:$0 sm:$0xff] }
  0x3f   :  { %663 = vmatpush1.bf16.xpose.msra.mxu0 %v662_v35  ;;  %601 = vmatprep.subr.bf16.mxu1 %v600_v36  ;;  %v112_v35 = vld [vmem:[%s1162_s1 + $0x2d0] sm:$0xff]  ;;  %v119_v36 = vld [vmem:[%s1162_s1 + $0x308] sm:$0xff]  ;;  %v626_v39 = vpack.c.bf16 %v115_v34, %v108_v33 }
  0x40   :  { %664 = vmatprep.subr.bf16.mxu0 %v734_v40  ;;  %v689_v41 = vpack.c.bf16 %v119_v36, %v112_v35 }
  0x45   :  { %258 = vmatmul.mubr.f32.vlgmr.msra.gmra.mrb[0].mxu1 %v15_v44  ;;  %v129_v44 = vld [vmem:[%s1162_s1 + $0x358] sm:$0xff] }
  0x46   :  { %603 = vmatpush1.bf16.xpose.msra.mxu1 %v602_v45  ;;  %398 = vmatmul.mubr.f32.vlgmr.msra.gmra.mrb[0].mxu0 %v19_v46  ;;  %v126_v45 = vld [vmem:[%s1162_s1 + $0x340] sm:$0xff]  ;;  %v133_v46 = vld [vmem:[%s1162_s1 + $0x378] sm:$0xff] }
  0x47   :  { %667 = vmatpush3.bf16.xpose.msk.msra.mxu0 %vm989_vm1, %v665_v47  ;;  %605 = vmatprep.subr.bf16.mxu1 %v604_v48  ;;  %v630_v47 = vpack.c.bf16 %v129_v44, %v122_v43  ;;  %v693_v48 = vpack.c.bf16 %v133_v46, %v126_v45 }
  0x48   :  { %668 = vmatprep.subr.bf16.mxu0 %v734_v40  ;;  %327 = vmatprep.mubr.f32.mxu1 %v18_v50  ;;  %v17_v50 = vld [vmem:[%s1161_s0 + $0x10] sm:$0xff] }
  0x49   :  { %565 = vmatprep.mubr.msk.f32.mxu0 %vm735_vm2, %v736_v57 }
  0x4e   :  { %607 = vmatpush1.bf16.xpose.msra.mxu1 %v606_v58 }
  0x4f   :  { %671 = vmatpush3.bf16.xpose.msk.msra.mxu0 %vm989_vm1, %v669_v59  ;;  %609 = vmatprep.subr.bf16.mxu1 %v608_v60 }
  0x50   :  { %672 = vmatprep.subr.bf16.mxu0 %v734_v40 }
  0x56   :  { %611 = vmatpush1.bf16.xpose.msra.mxu1 %v610_v3 }
  0x57   :  { %675 = vmatpush3.bf16.xpose.msk.msra.mxu0 %vm989_vm1, %v673_v4  ;;  %613 = vmatprep.subr.bf16.mxu1 %v612_v5 }
  0x58   :  { %676 = vmatprep.subr.bf16.mxu0 %v734_v40 }
  0x5e   :  { %615 = vmatpush1.bf16.xpose.msra.mxu1 %v614_v12 }
  0x5f   :  { %679 = vmatpush3.bf16.xpose.msk.msra.mxu0 %vm989_vm1, %v677_v13  ;;  %617 = vmatprep.subr.bf16.mxu1 %v616_v14 }
  0x60   :  { %680 = vmatprep.subr.bf16.mxu0 %v734_v40 }
  0x66   :  { %619 = vmatpush1.bf16.xpose.msra.mxu1 %v618_v21 }
  0x67   :  { %683 = vmatpush3.bf16.xpose.msk.msra.mxu0 %vm989_vm1, %v681_v22  ;;  %621 = vmatprep.subr.bf16.mxu1 %v620_v23 }
  0x68   :  { %684 = vmatprep.subr.bf16.mxu0 %v734_v40 }
  0x6e   :  { %623 = vmatpush1.bf16.xpose.msra.mxu1 %v622_v30 }
  0x6f   :  { %687 = vmatpush3.bf16.xpose.msk.msra.mxu0 %vm989_vm1, %v685_v31  ;;  %625 = vmatprep.subr.bf16.mxu1 %v624_v32 }
  0x70   :  { %688 = vmatprep.subr.bf16.mxu0 %v734_v40 }
  0x76   :  { %627 = vmatpush1.bf16.xpose.msra.mxu1 %v626_v39 }
  0x77   :  { %691 = vmatpush3.bf16.xpose.msk.msra.mxu0 %vm989_vm1, %v689_v41  ;;  %629 = vmatprep.subr.bf16.mxu1 %v628_v42 }
  0x78   :  { %692 = vmatprep.subr.bf16.mxu0 %v734_v40  ;;  %v21_v40 = vld [vmem:[%s1161_s0 + $0x30] sm:$0xff]  ;;  %s737_s0 = smov [#allocation2]  }
  0x79   :  { %s490_s1 = sshll.u32 %s737_s0, 4  ;;  %s491_s1 = int_to_ptr.vmem [resolvable:$true] %s490_s1 }
  0x7a   :  { %s710_s2 = scalar_lea.vmem %s491_s1, 128  ;;  %p715_p1 = scmp.lt.s32.totalorder %s491_s1, %s491_s1 }
  0x7b   :  { %p711_p0 = scmp.ne.s32.totalorder %s491_s1, %s710_s2  ;;  %p716_p2 = scmp.lt.s32.totalorder %s710_s2, %s710_s2 }
  0x7d   :  { %p717_p3 = por %p716_p2, %p715_p1 }
  0x7e   :  { %631 = vmatpush1.bf16.xpose.msra.mxu1 %v630_v47 }
  0x7f   :  { %695 = vmatpush3.bf16.xpose.msk.msra.mxu0 %vm989_vm1, %v693_v48  ;;  %p718_p4 = pnand %p717_p3, %p711_p0 }
  0x85   :  { %328 = vmatmul.mubr.f32.vlgmr.msra.gmra.mrb[0].mxu1 %v17_v50 }
  0x86   :  { %566 = vmatmul.mubr.msk.f32.vlgmr.msra.gmra.mrb[0].mxu0 %vm141_vm0, %v21_v40 }
 0x158   :  { %v329_v52 = vpop.f32.mrb[0].mxu1 }
 0x159   :  { %v696_v53 = vadd.f32 %v498_v51, %v329_v52  ;;  %v469_v54 = vpop.f32.mrb[0].mxu0  ;;  %v331_v49 = vpop.f32.mrb[1].mxu1 }
 0x15a   :  { %v567_v55 = vpop.f32.mrb[1].mxu0 }
 0x15b   :  { %v697_v56 = vadd.f32 %v696_v53, %v469_v54 }
 0x15d   :  { %473 = vmax.xlane.f32.xlu0 %v697_v56 }
 0x1ea   :  { %v474_v57 = vpop.xlane.xlu0 %473 }
 0x1eb   :  { %v475_v58 = vsub.f32 %v697_v56, %v474_v57 }
 0x1ed   :  { %v476_v59 = vmul.f32 1.442695, %v475_v58 }
 0x1ef   :  { %706 = vpow2.f32 %v476_v59 }
 0x1f9   :  { %v707_v60 = vpop.eup %706 }
 0x1fa   :  { %478 = vadd.xlane.f32.xlu0 %v707_v60 }
 0x287   :  { %v479_v61 = vpop.xlane.xlu0 %478 }
 0x288   :  { %708 = vlog2.f32 %v479_v61 }
 0x292   :  { %v709_v62 = vpop.eup %708 }
 0x293   :  { %v481_v63 = vmul.f32 0.6931472, %v709_v62 }
 0x295   :  { %v482_v0 = vsub.f32 %v475_v58, %v481_v63 }
 0x297   :  { %483 = vst [vmem:[#allocation2] sm:$0xff] %v482_v0 }
 0x298   :  { %721 = shalt.err (!%p718_p4)
}
 0x299   :  { %s722_s11 = scalar_lea.hbm %s1164_s3, 128 }
 0x29a   :  { %p723_p5 = scmp.ne.s32.totalorder %s1164_s3, %s722_s11  ;;  %p726_p6 = scmp.lt.u32.totalorder %s722_s11, %s1164_s3 }
 0x29c   :  { %p728_p7 = pnand %p726_p6, %p723_p5 }
 0x29e   :  { %731 = shalt.err (!%p728_p7)
}
 0x29f   :  { %493 = dma.vmem_to_hbm [thread:$0]  %s491_s1, 128, %s1164_s3, [#allocation3]  }
 0x2a0   :  { %732 = dma.done.wait [#allocation3], 128  }
 0x2a1   :  { %733 = vsyncadd [#allocation3], 4294967168 }
 0x2a2   :  { %497 = vsyncpa [#allocation3], 1 }

</bundles_post_ra>
